<compile_context>
chip_gen: v6e
topology: v6e:2x2x1
jax: 0.10.0
libtpu: 0.0.40
codegen_flags: <defaults>
</compile_context>

<pallas_src>
import functools

import jax
import jax.numpy as jnp
from jax import lax
from jax.experimental import pallas as pl
from jax.experimental.pallas import tpu as pltpu


def _ceil_to(x, m):
    return ((x + m - 1) // m) * m


def _choose_batch_tile(batch):
    """Large tiles for MXU M occupancy, but >=2 grid steps when possible (v7x 2 TCs)."""
    b8 = _ceil_to(batch, 8)
    if b8 <= 8:
        return 8
    return min(256, _ceil_to(pl.cdiv(b8, 2), 8))


def _dependency_kernel(idx_ref,     # (TB, S) int32, VMEM
                       fw1_ref,     # (S*V_pad, H) bf16 : fused emb @ W1 (padded vocab)
                       b1_ref,      # (1, H) f32
                       w2_ref,      # (H, O_pad) bf16 (zero-padded output cols)
                       b2_ref,      # (1, O_pad) f32 (zero-padded)
                       out_ref,     # (TB, O_pad) f32
                       *, S, V_pad):
    TB = idx_ref.shape[0]
    H = b1_ref.shape[1]

    idx = idx_ref[...]                                           # (TB, S) int32
    fw1 = fw1_ref[...]                                           # hoisted: one load, not S
    iota_v = lax.broadcasted_iota(jnp.int32, (TB, V_pad), 1)     # hoisted out of loop

    # Fused Embedding + first Linear: per sequence position, one-hot (exact in
    # bf16) @ pre-fused (V_pad, H) table on the MXU, accumulated in f32 vregs.
    acc = jnp.zeros((TB, H), jnp.float32)
    for s in range(S):                                           # static, S = 6
        onehot = (idx[:, s:s + 1] == iota_v).astype(jnp.bfloat16)     # (TB, V_pad)
        acc = acc + jnp.dot(onehot, fw1[s * V_pad:(s + 1) * V_pad, :],
                            preferred_element_type=jnp.float32)

    hidden = jnp.maximum(acc + b1_ref[...], 0.0).astype(jnp.bfloat16)  # bias + ReLU

    # Second Linear + bias, lane-dense (padded-to-128) unmasked store.
    out_ref[...] = (jnp.dot(hidden, w2_ref[...],
                            preferred_element_type=jnp.float32)
                    + b2_ref[...]).astype(out_ref.dtype)


def init_dependency_params(emb, w1, b1, w2, b2):
    """One-time weight prep: fuse Embedding into W1, pad, cast to bf16."""
    V, E = emb.shape
    SE, H = w1.shape
    S = SE // E
    assert SE == S * E
    O = w2.shape[1]

    V_pad = _ceil_to(V, 128)      # full-lane one-hot, MXU-native K
    O_pad = _ceil_to(O, 128)      # lane-dense output stores

    # fused[s, v, :] = emb[v, :] @ W1[s*E:(s+1)*E, :]  (computed in f32, stored bf16)
    fused = jnp.einsum('ve,seh->svh', emb, w1.reshape(S, E, H))       # (S, V, H)
    fused_p = (jnp.zeros((S, V_pad, H), jnp.float32)
               .at[:, :V, :].set(fused)
               .reshape(S * V_pad, H)
               .astype(jnp.bfloat16))

    w2_p = jnp.zeros((H, O_pad), jnp.bfloat16).at[:, :O].set(w2.astype(jnp.bfloat16))
    b2_p = jnp.zeros((1, O_pad), jnp.float32).at[:, :O].set(b2.reshape(1, O))
    b1_p = b1.reshape(1, H).astype(jnp.float32)

    return dict(fused_w1=fused_p, b1=b1_p, w2=w2_p, b2=b2_p,
                S=S, V_pad=V_pad, H=H, O=O, O_pad=O_pad)


def dependency_model_forward(indices, params, *, batch_tile=None):
    """indices: (B, S) int32; returns logits (B, outputs) float32."""
    B, S = indices.shape
    assert S == params["S"]
    V_pad, H, O, O_pad = params["V_pad"], params["H"], params["O"], params["O_pad"]

    if batch_tile is None:
        batch_tile = _choose_batch_tile(B)
    B_pad = _ceil_to(B, batch_tile)
    idx_p = jnp.zeros((B_pad, S), jnp.int32).at[:B, :].set(indices.astype(jnp.int32))

    kernel = functools.partial(_dependency_kernel, S=S, V_pad=V_pad)

    out = pl.pallas_call(
        kernel,
        out_shape=jax.ShapeDtypeStruct((B_pad, O_pad), jnp.float32),
        grid_spec=pltpu.PrefetchScalarGridSpec(
            num_scalar_prefetch=0,
            grid=(B_pad // batch_tile,),                         # tiled over batch
            in_specs=[
                pl.BlockSpec((batch_tile, S), lambda i: (i, 0)),     # indices
                pl.BlockSpec((S * V_pad, H),  lambda i: (0, 0)),     # fused emb@W1 (bf16)
                pl.BlockSpec((1, H),          lambda i: (0, 0)),     # b1
                pl.BlockSpec((H, O_pad),      lambda i: (0, 0)),     # W2 (bf16, padded)
                pl.BlockSpec((1, O_pad),      lambda i: (0, 0)),     # b2 (padded)
            ],
            out_specs=pl.BlockSpec((batch_tile, O_pad), lambda i: (i, 0)),
        ),
        compiler_params=pltpu.CompilerParams(
            dimension_semantics=("parallel",)),                  # batch axis -> both v7x TCs
    )(idx_p, params["fused_w1"], params["b1"], params["w2"], params["b2"])

    return out[:B, :O]


def reference_forward(indices, emb, w1, b1, w2, b2):
    embedded = emb[indices]                                  # (B, S, 128)
    x = embedded.reshape(indices.shape[0], -1)               # (B, 768)
    hidden = jnp.maximum(x @ w1 + b1, 0.0)
    return hidden @ w2 + b2


if __name__ == "__main__":
    # Small, deterministic configuration.
    word_types = 50      # vocabulary size
    outputs = 64         # number of parser actions
    batch = 20           # exercises batch padding and a 2-step grid
    seq = 6              # forced by 768 = 6 * 128
    embed_dim = 128
    hidden_dim = 128

    key = jax.random.PRNGKey(0)
    k_emb, k_w1, k_b1, k_w2, k_b2, k_idx = jax.random.split(key, 6)

    # Deterministic parameter init (shapes follow the PyTorch module).
    emb = jax.random.normal(k_emb, (word_types, embed_dim), jnp.float32)
    lim1 = 1.0 / jnp.sqrt(768.0)
    w1 = jax.random.uniform(k_w1, (seq * embed_dim, hidden_dim), jnp.float32, -lim1, lim1)
    b1 = jax.random.uniform(k_b1, (1, hidden_dim), jnp.float32, -lim1, lim1)
    lim2 = 1.0 / jnp.sqrt(128.0)
    w2 = jax.random.uniform(k_w2, (hidden_dim, outputs), jnp.float32, -lim2, lim2)
    b2 = jax.random.uniform(k_b2, (1, outputs), jnp.float32, -lim2, lim2)

    indices = jax.random.randint(k_idx, (batch, seq), 0, word_types, jnp.int32)

    # One-time weight prep (fusion / padding / bf16) -- not paid per forward.
    params = init_dependency_params(emb, w1, b1, w2, b2)

    out = dependency_model_forward(indices, params)
    out = jax.block_until_ready(out)

    ref = reference_forward(indices, emb, w1, b1, w2, b2)
    assert out.shape == (batch, outputs)
    assert jnp.allclose(out, ref, atol=2e-2, rtol=2e-2)

    print("KERNEL_OK")
</pallas_src>

<mosaic_0001>
module attributes {stable_mosaic.version = 11 : i64} {
  func.func @_dependency_kernel(%arg0: i32, %arg1: memref<16x6xi32, #tpu.memory_space<vmem>>, %arg2: memref<768x128xbf16, #tpu.memory_space<vmem>>, %arg3: memref<1x128xf32, #tpu.memory_space<vmem>>, %arg4: memref<128x128xbf16, #tpu.memory_space<vmem>>, %arg5: memref<1x128xf32, #tpu.memory_space<vmem>>, %arg6: memref<16x128xf32, #tpu.memory_space<vmem>>) attributes {dimension_semantics = [#tpu.dimension_semantics<parallel>], iteration_bounds = array<i64: 2>, scalar_prefetch = 0 : i64, scratch_operands = 0 : i64, tpu.core_type = #tpu.core_type<tc>, window_params = [{transform_indices = @transform_0, window_bounds = array<i64: 16, 6>}, {pipeline_mode = #tpu.pipeline_mode<synchronous>, transform_indices = @transform_1, window_bounds = array<i64: 768, 128>}, {pipeline_mode = #tpu.pipeline_mode<synchronous>, transform_indices = @transform_2, window_bounds = array<i64: 1, 128>}, {pipeline_mode = #tpu.pipeline_mode<synchronous>, transform_indices = @transform_3, window_bounds = array<i64: 128, 128>}, {pipeline_mode = #tpu.pipeline_mode<synchronous>, transform_indices = @transform_4, window_bounds = array<i64: 1, 128>}, {transform_indices = @transform_5, window_bounds = array<i64: 16, 128>}]} {
    %c0 = arith.constant 0 : index
    %c0_0 = arith.constant 0 : index
    %0 = vector.load %arg1[%c0, %c0_0] : memref<16x6xi32, #tpu.memory_space<vmem>>, vector<16x6xi32>
    %c0_1 = arith.constant 0 : index
    %c0_2 = arith.constant 0 : index
    %1 = vector.load %arg2[%c0_1, %c0_2] : memref<768x128xbf16, #tpu.memory_space<vmem>>, vector<768x128xbf16>
    %2 = tpu.iota {dimensions = array<i32: 1>} : vector<16x128xi32>
    %cst = arith.constant 0.000000e+00 : f32
    %3 = vector.broadcast %cst : f32 to vector<16x128xf32>
    %4 = vector.extract_strided_slice %0 {offsets = [0, 0], sizes = [16, 1], strides = [1, 1]} : vector<16x6xi32> to vector<16x1xi32>
    %5 = vector.broadcast %4 : vector<16x1xi32> to vector<16x128xi32>
    %6 = arith.cmpi eq, %5, %2 : vector<16x128xi32>
    %7 = arith.extui %6 : vector<16x128xi1> to vector<16x128xi32>
    %8 = arith.sitofp %7 : vector<16x128xi32> to vector<16x128xf32>
    %9 = arith.truncf %8 : vector<16x128xf32> to vector<16x128xbf16>
    %10 = vector.extract_strided_slice %1 {offsets = [0, 0], sizes = [128, 128], strides = [1, 1]} : vector<768x128xbf16> to vector<128x128xbf16>
    %cst_3 = arith.constant dense<0.000000e+00> : vector<16x128xf32>
    %11 = tpu.matmul %9, %10, %cst_3 {dimension_numbers = #tpu.dot_dimension_numbers<[1], [0], [0], [1], [0, 0, 1, 1], [], []>} : vector<16x128xbf16>, vector<128x128xbf16>, vector<16x128xf32> -> vector<16x128xf32>
    %12 = arith.addf %3, %11 : vector<16x128xf32>
    %13 = vector.extract_strided_slice %0 {offsets = [0, 1], sizes = [16, 1], strides = [1, 1]} : vector<16x6xi32> to vector<16x1xi32>
    %14 = vector.broadcast %13 : vector<16x1xi32> to vector<16x128xi32>
    %15 = arith.cmpi eq, %14, %2 : vector<16x128xi32>
    %16 = arith.extui %15 : vector<16x128xi1> to vector<16x128xi32>
    %17 = arith.sitofp %16 : vector<16x128xi32> to vector<16x128xf32>
    %18 = arith.truncf %17 : vector<16x128xf32> to vector<16x128xbf16>
    %19 = vector.extract_strided_slice %1 {offsets = [128, 0], sizes = [128, 128], strides = [1, 1]} : vector<768x128xbf16> to vector<128x128xbf16>
    %cst_4 = arith.constant dense<0.000000e+00> : vector<16x128xf32>
    %20 = tpu.matmul %18, %19, %cst_4 {dimension_numbers = #tpu.dot_dimension_numbers<[1], [0], [0], [1], [0, 0, 1, 1], [], []>} : vector<16x128xbf16>, vector<128x128xbf16>, vector<16x128xf32> -> vector<16x128xf32>
    %21 = arith.addf %12, %20 : vector<16x128xf32>
    %22 = vector.extract_strided_slice %0 {offsets = [0, 2], sizes = [16, 1], strides = [1, 1]} : vector<16x6xi32> to vector<16x1xi32>
    %23 = vector.broadcast %22 : vector<16x1xi32> to vector<16x128xi32>
    %24 = arith.cmpi eq, %23, %2 : vector<16x128xi32>
    %25 = arith.extui %24 : vector<16x128xi1> to vector<16x128xi32>
    %26 = arith.sitofp %25 : vector<16x128xi32> to vector<16x128xf32>
    %27 = arith.truncf %26 : vector<16x128xf32> to vector<16x128xbf16>
    %28 = vector.extract_strided_slice %1 {offsets = [256, 0], sizes = [128, 128], strides = [1, 1]} : vector<768x128xbf16> to vector<128x128xbf16>
    %cst_5 = arith.constant dense<0.000000e+00> : vector<16x128xf32>
    %29 = tpu.matmul %27, %28, %cst_5 {dimension_numbers = #tpu.dot_dimension_numbers<[1], [0], [0], [1], [0, 0, 1, 1], [], []>} : vector<16x128xbf16>, vector<128x128xbf16>, vector<16x128xf32> -> vector<16x128xf32>
    %30 = arith.addf %21, %29 : vector<16x128xf32>
    %31 = vector.extract_strided_slice %0 {offsets = [0, 3], sizes = [16, 1], strides = [1, 1]} : vector<16x6xi32> to vector<16x1xi32>
    %32 = vector.broadcast %31 : vector<16x1xi32> to vector<16x128xi32>
    %33 = arith.cmpi eq, %32, %2 : vector<16x128xi32>
    %34 = arith.extui %33 : vector<16x128xi1> to vector<16x128xi32>
    %35 = arith.sitofp %34 : vector<16x128xi32> to vector<16x128xf32>
    %36 = arith.truncf %35 : vector<16x128xf32> to vector<16x128xbf16>
    %37 = vector.extract_strided_slice %1 {offsets = [384, 0], sizes = [128, 128], strides = [1, 1]} : vector<768x128xbf16> to vector<128x128xbf16>
    %cst_6 = arith.constant dense<0.000000e+00> : vector<16x128xf32>
    %38 = tpu.matmul %36, %37, %cst_6 {dimension_numbers = #tpu.dot_dimension_numbers<[1], [0], [0], [1], [0, 0, 1, 1], [], []>} : vector<16x128xbf16>, vector<128x128xbf16>, vector<16x128xf32> -> vector<16x128xf32>
    %39 = arith.addf %30, %38 : vector<16x128xf32>
    %40 = vector.extract_strided_slice %0 {offsets = [0, 4], sizes = [16, 1], strides = [1, 1]} : vector<16x6xi32> to vector<16x1xi32>
    %41 = vector.broadcast %40 : vector<16x1xi32> to vector<16x128xi32>
    %42 = arith.cmpi eq, %41, %2 : vector<16x128xi32>
    %43 = arith.extui %42 : vector<16x128xi1> to vector<16x128xi32>
    %44 = arith.sitofp %43 : vector<16x128xi32> to vector<16x128xf32>
    %45 = arith.truncf %44 : vector<16x128xf32> to vector<16x128xbf16>
    %46 = vector.extract_strided_slice %1 {offsets = [512, 0], sizes = [128, 128], strides = [1, 1]} : vector<768x128xbf16> to vector<128x128xbf16>
    %cst_7 = arith.constant dense<0.000000e+00> : vector<16x128xf32>
    %47 = tpu.matmul %45, %46, %cst_7 {dimension_numbers = #tpu.dot_dimension_numbers<[1], [0], [0], [1], [0, 0, 1, 1], [], []>} : vector<16x128xbf16>, vector<128x128xbf16>, vector<16x128xf32> -> vector<16x128xf32>
    %48 = arith.addf %39, %47 : vector<16x128xf32>
    %49 = vector.extract_strided_slice %0 {offsets = [0, 5], sizes = [16, 1], strides = [1, 1]} : vector<16x6xi32> to vector<16x1xi32>
    %50 = vector.broadcast %49 : vector<16x1xi32> to vector<16x128xi32>
    %51 = arith.cmpi eq, %50, %2 : vector<16x128xi32>
    %52 = arith.extui %51 : vector<16x128xi1> to vector<16x128xi32>
    %53 = arith.sitofp %52 : vector<16x128xi32> to vector<16x128xf32>
    %54 = arith.truncf %53 : vector<16x128xf32> to vector<16x128xbf16>
    %55 = vector.extract_strided_slice %1 {offsets = [640, 0], sizes = [128, 128], strides = [1, 1]} : vector<768x128xbf16> to vector<128x128xbf16>
    %cst_8 = arith.constant dense<0.000000e+00> : vector<16x128xf32>
    %56 = tpu.matmul %54, %55, %cst_8 {dimension_numbers = #tpu.dot_dimension_numbers<[1], [0], [0], [1], [0, 0, 1, 1], [], []>} : vector<16x128xbf16>, vector<128x128xbf16>, vector<16x128xf32> -> vector<16x128xf32>
    %57 = arith.addf %48, %56 : vector<16x128xf32>
    %c0_9 = arith.constant 0 : index
    %c0_10 = arith.constant 0 : index
    %58 = vector.load %arg3[%c0_9, %c0_10] : memref<1x128xf32, #tpu.memory_space<vmem>>, vector<1x128xf32>
    %59 = vector.broadcast %58 : vector<1x128xf32> to vector<16x128xf32>
    %60 = arith.addf %57, %59 : vector<16x128xf32>
    %cst_11 = arith.constant 0.000000e+00 : f32
    %61 = vector.broadcast %cst_11 : f32 to vector<16x128xf32>
    %62 = arith.maximumf %60, %61 : vector<16x128xf32>
    %63 = arith.truncf %62 : vector<16x128xf32> to vector<16x128xbf16>
    %c0_12 = arith.constant 0 : index
    %c0_13 = arith.constant 0 : index
    %64 = vector.load %arg4[%c0_12, %c0_13] : memref<128x128xbf16, #tpu.memory_space<vmem>>, vector<128x128xbf16>
    %cst_14 = arith.constant dense<0.000000e+00> : vector<16x128xf32>
    %65 = tpu.matmul %63, %64, %cst_14 {dimension_numbers = #tpu.dot_dimension_numbers<[1], [0], [0], [1], [0, 0, 1, 1], [], []>} : vector<16x128xbf16>, vector<128x128xbf16>, vector<16x128xf32> -> vector<16x128xf32>
    %c0_15 = arith.constant 0 : index
    %c0_16 = arith.constant 0 : index
    %66 = vector.load %arg5[%c0_15, %c0_16] : memref<1x128xf32, #tpu.memory_space<vmem>>, vector<1x128xf32>
    %67 = vector.broadcast %66 : vector<1x128xf32> to vector<16x128xf32>
    %68 = arith.addf %65, %67 : vector<16x128xf32>
    %c0_17 = arith.constant 0 : index
    %c0_18 = arith.constant 0 : index
    %69 = vector.load %arg6[%c0_17, %c0_18] : memref<16x128xf32, #tpu.memory_space<vmem>>, vector<16x128xf32>
    tpu.vector_store %arg6[%c0_17, %c0_18], %68 {strides = array<i32>} : memref<16x128xf32, #tpu.memory_space<vmem>>, vector<16x128xf32>,
    return
  }
  func.func @transform_0(%arg0: i32) -> (i32, i32) {
    %c0_i32 = arith.constant 0 : i32
    %c0_i32_0 = arith.constant 0 : i32
    return %arg0, %c0_i32 : i32, i32
  }
  func.func @transform_1(%arg0: i32) -> (i32, i32) {
    %c0_i32 = arith.constant 0 : i32
    %c0_i32_0 = arith.constant 0 : i32
    %c0_i32_1 = arith.constant 0 : i32
    return %c0_i32, %c0_i32_0 : i32, i32
  }
  func.func @transform_2(%arg0: i32) -> (i32, i32) {
    %c0_i32 = arith.constant 0 : i32
    %c0_i32_0 = arith.constant 0 : i32
    %c0_i32_1 = arith.constant 0 : i32
    return %c0_i32, %c0_i32_0 : i32, i32
  }
  func.func @transform_3(%arg0: i32) -> (i32, i32) {
    %c0_i32 = arith.constant 0 : i32
    %c0_i32_0 = arith.constant 0 : i32
    %c0_i32_1 = arith.constant 0 : i32
    return %c0_i32, %c0_i32_0 : i32, i32
  }
  func.func @transform_4(%arg0: i32) -> (i32, i32) {
    %c0_i32 = arith.constant 0 : i32
    %c0_i32_0 = arith.constant 0 : i32
    %c0_i32_1 = arith.constant 0 : i32
    return %c0_i32, %c0_i32_0 : i32, i32
  }
  func.func @transform_5(%arg0: i32) -> (i32, i32) {
    %c0_i32 = arith.constant 0 : i32
    %c0_i32_0 = arith.constant 0 : i32
    return %arg0, %c0_i32 : i32, i32
  }
}

</mosaic_0001>

<bundles_post_ra>
// kernel: tpu_custom_call.1
= control target key start
LH: loop header
LB: loop body
LE: loop exit
PB: predicated region body
PF: predicated region fallthrough
CT: control target
= control target key end

     0   :  { %10 = vsyncpa [#allocation3], 0  ;;  %s2055_s0 = inlined_call_operand.vmem [shape: s32[32,6], index: 0, kind: input, shape index: {}]   ;;  %s2056_s1 = inlined_call_operand.hbm [shape: bf16[768,128], index: 1, kind: input, shape index: {}]   ;;  %s2057_s2 = inlined_call_operand.vmem [shape: f32[1,128], index: 2, kind: input, shape index: {}]   ;;  %s2058_s3 = inlined_call_operand.hbm [shape: bf16[128,128], index: 3, kind: input, shape index: {}]   ;;  %s2059_s4 = inlined_call_operand.vmem [shape: f32[1,128], index: 4, kind: input, shape index: {}]   ;;  %s2060_s5 = inlined_call_operand.hbm [shape: f32[32,128], index: 5, kind: output, shape index: {}]  }
   0x1   :  { %11 = vsyncpa [#allocation6], 0 }
   0x2   :  { %12 = vsyncpa [#allocation4], 0 }
   0x3   :  { %14 = vsyncpa [#allocation4 + $0x1], 0  ;;  %s1809_s18 = smov 0   ;;  %s1811_s19 = smov 0  }
   0x4   :  { %s1813_s20 = smov 0   ;;  %s1815_s21 = smov 0  }
   0x5 LB: > { %s1830_s22 = sadd.s32 4294967295, %s1761_s21   ;;  %s1201_s23 = sadd.s32 4294967294, %s1761_s21   ;;  %s1761_s21 = sphi %s1815_s21, %s2074_s21   ;;  %s1757_s20 = sphi %s1813_s20, %s2073_s20   ;;  %s1753_s19 = sphi %s1811_s19, %s2072_s19   ;;  %s1749_s18 = sphi %s1809_s18, %s2071_s18  }
   0x6   : > { %s1834_s24 = sadd.s32 1, %s1761_s21   ;;  %s137_s25 = sadd.s32 1, %s1757_s20 }
   0x7   : > { %s134_s26 = ssub.s32 %s1761_s21, %s1834_s24  ;;  %p147_p0 = scmp.ne.s32.totalorder %s1757_s20, %s1753_s19 }
   0x8   : > { %p135_p1 = scmp.eq.s32.totalorder %s134_s26, 0  ;;  %p148_p2 = scmp.eq.s32.totalorder %s1830_s22, 1 }
   0x9   : > { %p153_p3 = scmp.ne.s32.totalorder %s1753_s19, %s1749_s18  ;;  %p154_p4 = scmp.eq.s32.totalorder %s1201_s23, 1 }
   0xa   : > { %s1845_s27 = scalar_select %p135_p1, %s1757_s20, %s137_s25  }
   0xb   : > { %p1847_p5 = por %p148_p2, %p147_p0  ;;  %p1851_p6 = por %p154_p4, %p153_p3 }
   0xc   : > { %p1202_p7 = scmp.ge.s32.totalorder %s1761_s21, 1  ;;  %p161_p8 = scmp.lt.s32.totalorder %s1761_s21, 3 }
   0xd   : > { %s2063_s29 = scalar_select %p1851_p6, 1, 0 }
   0xe   : > { %p2061_p9 = scmp.eq.s32.totalorder %s1830_s22, 0  ;;  %p1858_p10 = pnand %p1202_p7, %p161_p8 }
   0xf   : > { %s1763_s6 = smov [#allocation2]   ;;  %s1764_s9 = smov [#allocation5]  }
  0x10   : > { %s173_s7 = sshll.u32 %s1763_s6, 4  ;;  %p1513_p11 = pneg %p1858_p10  ;;  %s174_s7 = int_to_ptr.vmem [resolvable:$true] %s173_s7 }
  0x11   : > { %s189_s10 = sshll.u32 %s1764_s9, 4  ;;  %s1652_s11 = scalar_lea.vmem %s174_s7, 6144  ;;  %s190_s10 = int_to_ptr.vmem [resolvable:$true] %s189_s10 }
  0x12   : > { %p1866_p12 = pnand %p2061_p9, %p1513_p11  ;;  %p1653_p0 = scmp.ne.s32.totalorder %s174_s7, %s1652_s11 }
  0x13   : > { %p1660_p3 = scmp.lt.s32.totalorder %s174_s7, %s174_s7  ;;  %p1661_p4 = scmp.lt.s32.totalorder %s1652_s11, %s1652_s11 }
  0x14   : > { %p1643_p13 = pneg %p1866_p12 }
  0x15   : > { %p1662_p7 = por %p1661_p4, %p1660_p3 }
  0x16   : > { %p1655_p1 = pnand %p1653_p0, %p1643_p13 }
  0x18   : > { %p1656_p2 = pneg %p1655_p1 }
  0x1a   : > { %p1663_p8 = pnand %p1662_p7, %p1656_p2 }
  0x1c   : > { %1666 = shalt.err (!%p1663_p8)
}
  0x1d   : > { %s1765_s12 = smov 64   ;;  %s1766_s13 = smov 4  }
  0x1e   : > { %1516 = dma.hbm_to_vmem [thread:$0]  (!%p1866_p12), %s2056_s1, 6144, %s174_s7, [#allocation3], %s1765_s12, %s1765_s12, %s1766_s13  }
  0x1f   : > { %s1678_s16 = scalar_lea.vmem %s190_s10, 1024  ;;  %p1686_p9 = scmp.lt.s32.totalorder %s190_s10, %s190_s10 }
  0x20   : > { %p1679_p11 = scmp.ne.s32.totalorder %s190_s10, %s1678_s16  ;;  %p1687_p6 = scmp.lt.s32.totalorder %s1678_s16, %s1678_s16 }
  0x22   : > { %p1681_p0 = pnand %p1679_p11, %p1643_p13  ;;  %p1688_p3 = por %p1687_p6, %p1686_p9 }
  0x24   : > { %p1682_p1 = pneg %p1681_p0 }
  0x26   : > { %p1689_p2 = pnand %p1688_p3, %p1682_p1 }
  0x28   : > { %1692 = shalt.err (!%p1689_p2)
}
  0x29   : > { %1519 = dma.hbm_to_vmem [thread:$0]  (!%p1866_p12), %s2058_s3, 1024, %s190_s10, [#allocation6], %s1765_s12, %s1765_s12, %s1766_s13  }
  0x2a   : > { %217 = sbr.rel (%p1858_p10) target bundleno = 673 (0x2a1), region = 40  ;;  %p2066_p4 = scmp.eq.s32.totalorder (!%p1858_p10), %s1830_s22, 0 }
  0x2f   : > { %1736 = dma.done.wait (%p2066_p4), [#allocation3], 6144   ;;  %p2067_p13 = pmov %p2066_p4 }
  0x30   : > { %p2068_p7 = pmov %p2066_p4 }
  0x31   : > { %1738 = vsyncadd (%p2067_p13), [#allocation3], 4294961152 }
  0x32   : > { %1740 = dma.done.wait (%p2068_p7), [#allocation6], 1024   ;;  %p2069_p6 = pmov %p2066_p4 }
  0x33   : > { %s1210_s25 = sshll.u32 %s1830_s22, 1  ;;  %v1767_v0 = vmov 1   ;;  %v1768_v1 = vmov 0   ;;  %v1769_v2 = vmov 0.0   ;;  %v1585_v5 = vld [vmem:[#allocation2 + $0x78] sm:$0xff]   ;;  %v1587_v7 = vld [vmem:[#allocation2 + $0x70] sm:$0xff]   ;;  %v355_v25 = vlaneseq }
  0x34   : > { %1742 = vsyncadd (%p2069_p6), [#allocation6], 4294966272  ;;  %1576 = vset.pattern.permute.xlu0 %v1767_v0  ;;  %1577 = vset.pattern.permute.xlu1 %v1768_v1  ;;  %p250_p9 = scmp.lt.s32.totalorder %s1210_s25, 3  ;;  %v1586_v6 = vld [vmem:[#allocation2 + $0x38] sm:$0xff]   ;;  %vm1770_vm0 = vmmov 0   ;;  %v1588_v8 = vld [vmem:[#allocation2 + $0x30] sm:$0xff]  }
  0x35   : > { %1363 = vmatprep.subr.bf16.mxu0 %v1769_v2  ;;  %1383 = vmatprep.subr.bf16.mxu1 %v1769_v2  ;;  %v1589_v9 = vld [vmem:[#allocation2 + $0x68] sm:$0xff]   ;;  %v1771_v11 = vmov 2   ;;  %v1591_v12 = vld [vmem:[#allocation2 + $0x60] sm:$0xff]   ;;  %v1772_v14 = vmov 3   ;;  %v1593_v15 = vld [vmem:[#allocation2 + $0x58] sm:$0xff]   ;;  %v1773_v17 = vmov 4  }
  0x36   : > { %s2076_s25 = smov (!%p250_p9, %s1210_s25), 3  ;;  %1364 = vmatpush3.bf16.msra.mxu0 %v1585_v5  ;;  %1379 = vmatprep.mubr.msk.bf16.mxu0 %vm1770_vm0, %v1769_v2  ;;  %v1590_v10 = vld [vmem:[#allocation2 + $0x28] sm:$0xff]   ;;  %v1592_v13 = vld [vmem:[#allocation2 + $0x20] sm:$0xff]   ;;  %v1594_v16 = vld [vmem:[#allocation2 + $0x18] sm:$0xff]   ;;  %v1774_v18 = vmov 5   ;;  %v1932_v28 = vand.u32 127, %v355_v25 }
  0x37   : > { %s1211_s26 = sshll.u32 %s2076_s25, 3  ;;  %1384 = vmatpush3.bf16.msra.mxu1 %v1586_v6  ;;  %1365 = vmatprep.subr.bf16.mxu0 %v1769_v2  ;;  %v1595_v19 = vld [vmem:[#allocation2 + $0x50] sm:$0xff]   ;;  %v1597_v21 = vld [vmem:[#allocation2 + $0x48] sm:$0xff]   ;;  %v1599_v23 = vld [vmem:[#allocation2 + $0x40] sm:$0xff]   ;;  %v1775_v33 = vmov 1.0|1.0  }
  0x38   : > { %s253_s7 = scalar_lea.vmem %s2055_s0, %s1211_s26  ;;  %1385 = vmatprep.subr.bf16.mxu1 %v1769_v2  ;;  %1399 = vmatprep.mubr.msk.bf16.mxu1 %vm1770_vm0, %v1769_v2  ;;  %v1596_v20 = vld [vmem:[#allocation2 + $0x10] sm:$0xff]   ;;  %v1598_v22 = vld [vmem:[#allocation2 + $0x8] sm:$0xff]   ;;  %v1600_v24 = vld [vmem:[#allocation2] sm:$0xff]   ;;  %s246_s10 = sand.u32 1, %s1753_s19  }
  0x39   : > { %v257_v3 = vld [vmem:[%s253_s7] sm:$0xff]  ;;  %v1904_v4 = vld [vmem:[%s253_s7 + $0x8] sm:$0xff]  ;;  %v1602_v31 = vld [vmem:[#allocation2 + $0xf8] sm:$0xff]   ;;  %s1209_s11 = sshll.u32 %s246_s10, 4  ;;  %s1299_s16 = sshll.u32 %s1830_s22, 8 }
  0x3a   : > { %358 = vperm.xlu1 %1577, %v257_v3   ;;  %371 = vperm.xlu0 %1576, %v257_v3   ;;  %v1601_v32 = vld [vmem:[#allocation2 + $0xb8] sm:$0xff]   ;;  %v1604_v34 = vld [vmem:[#allocation2 + $0xf0] sm:$0xff]   ;;  %v1606_v36 = vld [vmem:[#allocation2 + $0xe8] sm:$0xff]   ;;  %s248_s14 = scalar_lea.vmem [#allocation7], %s1209_s11  ;;  %s2013_s25 = scalar_lea.hbm %s2060_s5, %s1299_s16 }
  0x3b   : > { %1366 = vmatpush3.bf16.msra.mxu0 %v1587_v7  ;;  %1386 = vmatpush3.bf16.msra.mxu1 %v1588_v8  ;;  %v1603_v35 = vld [vmem:[#allocation2 + $0xb0] sm:$0xff]   ;;  %v1605_v37 = vld [vmem:[#allocation2 + $0xa8] sm:$0xff]   ;;  %v1608_v38 = vld [vmem:[#allocation2 + $0xe0] sm:$0xff]   ;;  %s1117_s15 = sshll.u32 %s248_s14, 4  ;;  %s2015_s26 = scalar_lea.sflag [#allocation4], %s246_s10  ;;  %s2008_s15 = int_to_ptr.vmem [resolvable:$true] %s1117_s15 }
  0x3c   : > { %1367 = vmatprep.subr.bf16.mxu0 %v1769_v2  ;;  %1387 = vmatprep.subr.bf16.mxu1 %v1769_v2  ;;  %v1607_v39 = vld [vmem:[#allocation2 + $0xa0] sm:$0xff]   ;;  %v1610_v40 = vld [vmem:[#allocation2 + $0xd8] sm:$0xff]   ;;  %v1612_v42 = vld [vmem:[#allocation2 + $0xd0] sm:$0xff]   ;;  %s1693_s30 = scalar_lea.vmem %s2008_s15, 256  ;;  %s1776_s22 = smov [#allocation7]  }
  0x3d   : > { %v1609_v41 = vld [vmem:[#allocation2 + $0x98] sm:$0xff]   ;;  %v1611_v45 = vld [vmem:[#allocation2 + $0x90] sm:$0xff]   ;;  %v1613_v46 = vld [vmem:[#allocation2 + $0xc8] sm:$0xff]   ;;  %p1694_p10 = scmp.ne.s32.totalorder %s2008_s15, %s1693_s30  ;;  %s1697_s6 = sshll.u32 %s1776_s22, 4  ;;  %s1698_s6 = int_to_ptr.vmem [resolvable:$false] %s1697_s6 }
  0x3e   : > { %361 = vperm.xlu1 %1577, %v1904_v4   ;;  %374 = vperm.xlu0 %1576, %v1904_v4   ;;  %v1614_v47 = vld [vmem:[#allocation2 + $0x88] sm:$0xff]   ;;  %v1615_v50 = vld [vmem:[#allocation2 + $0xc0] sm:$0xff]   ;;  %v1618_v52 = vld [vmem:[#allocation2 + $0x178] sm:$0xff]   ;;  %s1699_s7 = scalar_lea.vmem %s1698_s6, 512  ;;  %p1700_p11 = scmp.lt.s32.totalorder %s2008_s15, %s1698_s6 }
  0x3f   : > { %1368 = vmatpush3.bf16.msra.mxu0 %v1589_v9  ;;  %1388 = vmatpush3.bf16.msra.mxu1 %v1590_v10  ;;  %v1616_v51 = vld [vmem:[#allocation2 + $0x80] sm:$0xff]   ;;  %v1617_v53 = vld [vmem:[#allocation2 + $0x138] sm:$0xff]   ;;  %v1620_v54 = vld [vmem:[#allocation2 + $0x170] sm:$0xff]   ;;  %p1695_p12 = pnand %p1694_p10, %p1847_p5  ;;  %p1701_p0 = scmp.lt.s32.totalorder %s1699_s7, %s1693_s30 }
  0x40   : > { %1369 = vmatprep.subr.bf16.mxu0 %v1769_v2  ;;  %1389 = vmatprep.subr.bf16.mxu1 %v1769_v2  ;;  %v1619_v55 = vld [vmem:[#allocation2 + $0x130] sm:$0xff]   ;;  %v1622_v56 = vld [vmem:[#allocation2 + $0x168] sm:$0xff]   ;;  %v1624_v58 = vld [vmem:[#allocation2 + $0x160] sm:$0xff]  }
  0x41   : > { %v1621_v57 = vld [vmem:[#allocation2 + $0x128] sm:$0xff]   ;;  %v1623_v59 = vld [vmem:[#allocation2 + $0x120] sm:$0xff]   ;;  %v1626_v60 = vld [vmem:[#allocation2 + $0x158] sm:$0xff]   ;;  %p1696_p8 = pneg %p1695_p12  ;;  %p1702_p1 = por %p1701_p0, %p1700_p11 }
  0x42   : > { %1579 = vset.pattern.permute.xlu1 %v1771_v11  ;;  %1578 = vset.pattern.permute.xlu0 %v1771_v11  ;;  %v1625_v62 = vld [vmem:[#allocation2 + $0x118] sm:$0xff]   ;;  %v1628_v63 = vld [vmem:[#allocation2 + $0x150] sm:$0xff]   ;;  %v1632_v7 = vld [vmem:[#allocation2 + $0x140] sm:$0xff]  }
  0x43   : > { %565 = vperm.xlu1 %1579, %v1904_v4   ;;  %562 = vperm.xlu0 %1578, %v257_v3   ;;  %v1627_v0 = vld [vmem:[#allocation2 + $0x110] sm:$0xff]   ;;  %v1631_v8 = vld [vmem:[#allocation2 + $0x100] sm:$0xff]   ;;  %v1633_v9 = vld [vmem:[#allocation5 + $0x38] sm:$0xff]   ;;  %p1703_p3 = pnand %p1702_p1, %p1696_p8 }
  0x44   : > { %1370 = vmatpush3.bf16.msra.mxu0 %v1591_v12  ;;  %1390 = vmatpush3.bf16.msra.mxu1 %v1592_v13  ;;  %v1634_v10 = vld [vmem:[#allocation5 + $0x30] sm:$0xff]   ;;  %v1635_v11 = vld [vmem:[#allocation5 + $0x28] sm:$0xff]   ;;  %v1636_v12 = vld [vmem:[#allocation5 + $0x20] sm:$0xff]  }
  0x45   : > { %1371 = vmatprep.subr.bf16.mxu0 %v1769_v2  ;;  %1391 = vmatprep.subr.bf16.mxu1 %v1769_v2  ;;  %v1637_v13 = vld [vmem:[#allocation5 + $0x18] sm:$0xff]  }
  0x47   : > { %1580 = vset.pattern.permute.xlu1 %v1772_v14  ;;  %1581 = vset.pattern.permute.xlu0 %v1772_v14  ;;  %v1638_v14 = vld [vmem:[#allocation5 + $0x10] sm:$0xff]  }
  0x48   : > { %666 = vperm.xlu1 %1580, %v257_v3   ;;  %669 = vperm.xlu0 %1581, %v1904_v4  }
  0x49   : > { %1372 = vmatpush3.bf16.msra.mxu0 %v1593_v15  ;;  %1392 = vmatpush3.bf16.msra.mxu1 %v1594_v16  ;;  %v1639_v15 = vld [vmem:[#allocation5 + $0x8] sm:$0xff]   ;;  %v1640_v16 = vld [vmem:[#allocation5] sm:$0xff]  }
  0x4a   : > { %1373 = vmatprep.subr.bf16.mxu0 %v1769_v2  ;;  %1393 = vmatprep.subr.bf16.mxu1 %v1769_v2 }
  0x4c   : > { %1582 = vset.pattern.permute.xlu1 %v1773_v17  ;;  %1583 = vset.pattern.permute.xlu0 %v1774_v18 }
  0x4d   : > { %770 = vperm.xlu1 %1582, %v257_v3   ;;  %874 = vperm.xlu0 %1583, %v257_v3   ;;  %v1630_v3 = vld [vmem:[#allocation2 + $0x148] sm:$0xff]  }
  0x4e   : > { %1374 = vmatpush3.bf16.msra.mxu0 %v1595_v19  ;;  %1394 = vmatpush3.bf16.msra.mxu1 %v1596_v20 }
  0x4f   : > { %1375 = vmatprep.subr.bf16.mxu0 %v1769_v2  ;;  %1395 = vmatprep.subr.bf16.mxu1 %v1769_v2 }
  0x51   : > { %773 = vperm.xlu1 %1582, %v1904_v4  }
  0x52   : > { %1376 = vmatpush3.bf16.msra.mxu0 %v1597_v21  ;;  %1396 = vmatpush3.bf16.msra.mxu1 %v1598_v22 }
  0x53   : > { %1377 = vmatprep.subr.bf16.mxu0 %v1769_v2  ;;  %1397 = vmatprep.subr.bf16.mxu1 %v1769_v2 }
  0x55   : > { %1584 = vset.pattern.permute.xlu1 %v1774_v18 }
  0x56   : > { %877 = vperm.xlu1 %1584, %v1904_v4   ;;  %1378 = vmatpush3.bf16.msra.mxu0 %v1599_v23  ;;  %v1629_v4 = vld [vmem:[#allocation2 + $0x108] sm:$0xff]  }
  0x57   : > { %1398 = vmatpush3.bf16.msra.mxu1 %v1600_v24  ;;  %1403 = vmatprep.subr.bf16.mxu0 %v1769_v2 }
  0x58   : > { %1423 = vmatprep.subr.bf16.mxu1 %v1769_v2 }
  0xb5   : > { %v359_v26 = vpop.permute.xlu1 %358  ;;  %v372_v27 = vpop.permute.xlu0 %371 }
  0xb6   : > { %vm363_vm1 = vcmp.eq.s32.totalorder %v359_v26, %v1932_v28  ;;  %vm376_vm4 = vcmp.eq.s32.totalorder %v372_v27, %v1932_v28 }
  0xb9   : > { %v362_v29 = vpop.permute.xlu1 %361  ;;  %v375_v30 = vpop.permute.xlu0 %374 }
  0xba   : > { %vm364_vm2 = vcmp.eq.s32.totalorder %v362_v29, %v1932_v28  ;;  %vm377_vm3 = vcmp.eq.s32.totalorder %v375_v30, %v1932_v28 }
  0xbb   : > { %vm1234_vm5 = vmpackc.low %vm364_vm2, %vm363_vm1 }
  0xbc   : > { %vm1224_vm6 = vmpackc.low %vm377_vm3, %vm376_vm4  ;;  %1400 = vmatmul.mubr.msk.bf16.vlgmr.msra.gmra.mxu1 %vm1234_vm5, %v1775_v33 }
  0xbd   : > { %1380 = vmatmul.mubr.msk.bf16.vlgmr.msra.gmra.mxu0 %vm1224_vm6, %v1775_v33  ;;  %1424 = vmatpush3.bf16.msra.mxu1 %v1602_v31 }
  0xbe   : > { %1404 = vmatpush3.bf16.msra.mxu0 %v1601_v32  ;;  %1425 = vmatprep.subr.bf16.mxu1 %v1769_v2  ;;  %v566_v43 = vpop.permute.xlu1 %565  ;;  %v563_v44 = vpop.permute.xlu0 %562 }
  0xbf   : > { %1405 = vmatprep.subr.bf16.mxu0 %v1769_v2  ;;  %1419 = vmatprep.mubr.msk.bf16.mxu0 %vm1770_vm0, %v1769_v2  ;;  %vm568_vm9 = vcmp.eq.s32.totalorder %v566_v43, %v1932_v28  ;;  %vm567_vm10 = vcmp.eq.s32.totalorder %v563_v44, %v1932_v28 }
  0xc0   : > { %1439 = vmatprep.mubr.msk.bf16.mxu1 %vm1770_vm0, %v1769_v2  ;;  %vm1246_vm12 = vmpackc.low %vm568_vm9, %vm567_vm10 }
  0xc1   : > { %1426 = vmatpush3.bf16.msra.mxu1 %v1604_v34 }
  0xc2   : > { %1406 = vmatpush3.bf16.msra.mxu0 %v1603_v35  ;;  %1427 = vmatprep.subr.bf16.mxu1 %v1769_v2 }
  0xc3   : > { %1407 = vmatprep.subr.bf16.mxu0 %v1769_v2  ;;  %v667_v48 = vpop.permute.xlu1 %666  ;;  %v670_v49 = vpop.permute.xlu0 %669 }
  0xc4   : > { %vm671_vm7 = vcmp.eq.s32.totalorder %v667_v48, %v1932_v28  ;;  %vm672_vm8 = vcmp.eq.s32.totalorder %v670_v49, %v1932_v28 }
  0xc5   : > { %1428 = vmatpush3.bf16.msra.mxu1 %v1606_v36  ;;  %vm1258_vm11 = vmpackc.low %vm672_vm8, %vm671_vm7 }
  0xc6   : > { %1408 = vmatpush3.bf16.msra.mxu0 %v1605_v37  ;;  %1429 = vmatprep.subr.bf16.mxu1 %v1769_v2 }
  0xc7   : > { %1409 = vmatprep.subr.bf16.mxu0 %v1769_v2 }
  0xc8   : > { %v771_v61 = vpop.permute.xlu1 %770  ;;  %v875_v6 = vpop.permute.xlu0 %874 }
  0xc9   : > { %1430 = vmatpush3.bf16.msra.mxu1 %v1608_v38  ;;  %vm879_vm14 = vcmp.eq.s32.totalorder %v875_v6, %v1932_v28  ;;  %vm775_vm15 = vcmp.eq.s32.totalorder %v771_v61, %v1932_v28 }
  0xca   : > { %1410 = vmatpush3.bf16.msra.mxu0 %v1607_v39  ;;  %1431 = vmatprep.subr.bf16.mxu1 %v1769_v2 }
  0xcb   : > { %1411 = vmatprep.subr.bf16.mxu0 %v1769_v2 }
  0xcc   : > { %v774_v1 = vpop.permute.xlu1 %773 }
  0xcd   : > { %1432 = vmatpush3.bf16.msra.mxu1 %v1610_v40  ;;  %vm776_vm1 = vcmp.eq.s32.totalorder %v774_v1, %v1932_v28 }
  0xce   : > { %1412 = vmatpush3.bf16.msra.mxu0 %v1609_v41  ;;  %1433 = vmatprep.subr.bf16.mxu1 %v1769_v2  ;;  %vm1270_vm3 = vmpackc.low %vm776_vm1, %vm775_vm15 }
  0xcf   : > { %1413 = vmatprep.subr.bf16.mxu0 %v1769_v2 }
  0xd1   : > { %1434 = vmatpush3.bf16.msra.mxu1 %v1612_v42  ;;  %v878_v5 = vpop.permute.xlu1 %877 }
  0xd2   : > { %1414 = vmatpush3.bf16.msra.mxu0 %v1611_v45  ;;  %1435 = vmatprep.subr.bf16.mxu1 %v1769_v2  ;;  %vm880_vm13 = vcmp.eq.s32.totalorder %v878_v5, %v1932_v28  ;;  %v1284_v45 = vld [vmem:[%s2057_s2] ss:$0 sm:$0xff] }
  0xd3   : > { %1415 = vmatprep.subr.bf16.mxu0 %v1769_v2  ;;  %vm1282_vm2 = vmpackc.low %vm880_vm13, %vm879_vm14 }
  0xd5   : > { %1436 = vmatpush3.bf16.msra.mxu1 %v1613_v46 }
  0xd6   : > { %1416 = vmatpush3.bf16.msra.mxu0 %v1614_v47  ;;  %1437 = vmatprep.subr.bf16.mxu1 %v1769_v2 }
  0xd7   : > { %1417 = vmatprep.subr.bf16.mxu0 %v1769_v2 }
  0xd9   : > { %1438 = vmatpush3.bf16.msra.mxu1 %v1615_v50 }
  0xda   : > { %1418 = vmatpush3.bf16.msra.mxu0 %v1616_v51  ;;  %1463 = vmatprep.subr.bf16.mxu1 %v1769_v2 }
  0xdb   : > { %1443 = vmatprep.subr.bf16.mxu0 %v1769_v2 }
  0xdc   : > { %1440 = vmatmul.mubr.msk.bf16.vlgmr.msra.gmra.mxu1 %vm1258_vm11, %v1775_v33 }
  0xdd   : > { %1420 = vmatmul.mubr.msk.bf16.vlgmr.msra.gmra.mxu0 %vm1246_vm12, %v1775_v33  ;;  %1464 = vmatpush3.bf16.msra.mxu1 %v1618_v52 }
  0xde   : > { %1444 = vmatpush3.bf16.msra.mxu0 %v1617_v53  ;;  %1465 = vmatprep.subr.bf16.mxu1 %v1769_v2 }
  0xdf   : > { %1445 = vmatprep.subr.bf16.mxu0 %v1769_v2  ;;  %1459 = vmatprep.mubr.msk.bf16.mxu0 %vm1770_vm0, %v1769_v2 }
  0xe0   : > { %1479 = vmatprep.mubr.msk.bf16.mxu1 %vm1770_vm0, %v1769_v2 }
  0xe1   : > { %1466 = vmatpush3.bf16.msra.mxu1 %v1620_v54 }
  0xe2   : > { %1446 = vmatpush3.bf16.msra.mxu0 %v1619_v55  ;;  %1467 = vmatprep.subr.bf16.mxu1 %v1769_v2 }
  0xe3   : > { %1447 = vmatprep.subr.bf16.mxu0 %v1769_v2 }
  0xe5   : > { %1468 = vmatpush3.bf16.msra.mxu1 %v1622_v56  ;;  %v1285_v56 = vld [vmem:[%s2059_s4] ss:$0 sm:$0xff] }
  0xe6   : > { %1448 = vmatpush3.bf16.msra.mxu0 %v1621_v57  ;;  %1469 = vmatprep.subr.bf16.mxu1 %v1769_v2 }
  0xe7   : > { %1449 = vmatprep.subr.bf16.mxu0 %v1769_v2 }
  0xe9   : > { %1470 = vmatpush3.bf16.msra.mxu1 %v1624_v58 }
  0xea   : > { %1450 = vmatpush3.bf16.msra.mxu0 %v1623_v59  ;;  %1471 = vmatprep.subr.bf16.mxu1 %v1769_v2 }
  0xeb   : > { %1451 = vmatprep.subr.bf16.mxu0 %v1769_v2 }
  0xed   : > { %1472 = vmatpush3.bf16.msra.mxu1 %v1626_v60 }
  0xee   : > { %1452 = vmatpush3.bf16.msra.mxu0 %v1625_v62  ;;  %1473 = vmatprep.subr.bf16.mxu1 %v1769_v2 }
  0xef   : > { %1453 = vmatprep.subr.bf16.mxu0 %v1769_v2 }
  0xf1   : > { %1474 = vmatpush3.bf16.msra.mxu1 %v1628_v63 }
  0xf2   : > { %1454 = vmatpush3.bf16.msra.mxu0 %v1627_v0  ;;  %1475 = vmatprep.subr.bf16.mxu1 %v1769_v2 }
  0xf3   : > { %1455 = vmatprep.subr.bf16.mxu0 %v1769_v2 }
  0xf5   : > { %1476 = vmatpush3.bf16.msra.mxu1 %v1630_v3 }
  0xf6   : > { %1456 = vmatpush3.bf16.msra.mxu0 %v1629_v4  ;;  %1477 = vmatprep.subr.bf16.mxu1 %v1769_v2 }
  0xf7   : > { %1457 = vmatprep.subr.bf16.mxu0 %v1769_v2 }
  0xf9   : > { %1478 = vmatpush3.bf16.msra.mxu1 %v1632_v7 }
  0xfa   : > { %1458 = vmatpush3.bf16.msra.mxu0 %v1631_v8 }
  0xfb   : > { %1483 = vmatprep.subr.bf16.mxu0 %v1769_v2 }
  0xfc   : > { %1480 = vmatmul.mubr.msk.bf16.vlgmr.msra.gmra.mxu1 %vm1282_vm2, %v1775_v33 }
  0xfd   : > { %1460 = vmatmul.mubr.msk.bf16.vlgmr.msra.gmra.mxu0 %vm1270_vm3, %v1775_v33 }
  0xfe   : > { %1499 = vmatprep.mubr.msk.bf16.mxu0 %vm1770_vm0, %v1769_v2  ;;  %1484 = vmatpush3.bf16.msra.mxu0 %v1633_v9 }
  0xff   : > { %1485 = vmatprep.subr.bf16.mxu0 %v1769_v2 }
 0x102   : > { %1486 = vmatpush3.bf16.msra.mxu0 %v1634_v10 }
 0x103   : > { %1487 = vmatprep.subr.bf16.mxu0 %v1769_v2 }
 0x106   : > { %1488 = vmatpush3.bf16.msra.mxu0 %v1635_v11 }
 0x107   : > { %1489 = vmatprep.subr.bf16.mxu0 %v1769_v2 }
 0x10a   : > { %1490 = vmatpush3.bf16.msra.mxu0 %v1636_v12 }
 0x10b   : > { %1491 = vmatprep.subr.bf16.mxu0 %v1769_v2 }
 0x10e   : > { %1492 = vmatpush3.bf16.msra.mxu0 %v1637_v13 }
 0x10f   : > { %1493 = vmatprep.subr.bf16.mxu0 %v1769_v2 }
 0x112   : > { %1494 = vmatpush3.bf16.msra.mxu0 %v1638_v14 }
 0x113   : > { %1495 = vmatprep.subr.bf16.mxu0 %v1769_v2 }
 0x116   : > { %1496 = vmatpush3.bf16.msra.mxu0 %v1639_v15 }
 0x117   : > { %1497 = vmatprep.subr.bf16.mxu0 %v1769_v2 }
 0x11a   : > { %1498 = vmatpush3.bf16.msra.mxu0 %v1640_v16 }
 0x17c   : > { %v554_v17 = vpop.f32.mrf.mxu1 }
 0x17d   : > { %v465_v18 = vpop.f32.mrf.mxu0 }
 0x17e   : > { %v1401_v19 = vpop.f32.mrf.mxu1  ;;  %v555_v33 = vadd.f32 %v554_v17, %v465_v18 }
 0x17f   : > { %v1381_v20 = vpop.f32.mrf.mxu0 }
 0x180   : > { %v557_v21 = vpop.f32.mrf.mxu1 }
 0x181   : > { %v468_v22 = vpop.f32.mrf.mxu0 }
 0x182   : > { %v1402_v23 = vpop.f32.mrf.mxu1  ;;  %v558_v34 = vadd.f32 %v557_v21, %v468_v22 }
 0x183   : > { %v1382_v24 = vpop.f32.mrf.mxu0 }
 0x19c   : > { %v760_v25 = vpop.f32.mrf.mxu1 }
 0x19d   : > { %v656_v26 = vpop.f32.mrf.mxu0 }
 0x19e   : > { %v1441_v27 = vpop.f32.mrf.mxu1  ;;  %v663_v2 = vadd.f32 %v656_v26, %v555_v33 }
 0x19f   : > { %v1421_v28 = vpop.f32.mrf.mxu0 }
 0x1a0   : > { %v763_v29 = vpop.f32.mrf.mxu1  ;;  %v767_v35 = vadd.f32 %v760_v25, %v663_v2 }
 0x1a1   : > { %v659_v30 = vpop.f32.mrf.mxu0 }
 0x1a2   : > { %v1442_v31 = vpop.f32.mrf.mxu1  ;;  %v664_v36 = vadd.f32 %v659_v30, %v558_v34 }
 0x1a3   : > { %v1422_v32 = vpop.f32.mrf.mxu0 }
 0x1a4   : > { %v768_v42 = vadd.f32 %v763_v29, %v664_v36 }
 0x1bc   : > { %v968_v37 = vpop.f32.mrf.mxu1 }
 0x1bd   : > { %v864_v38 = vpop.f32.mrf.mxu0 }
 0x1be   : > { %v871_v39 = vadd.f32 %v864_v38, %v767_v35  ;;  %v1481_v40 = vpop.f32.mrf.mxu1 }
 0x1bf   : > { %v1461_v41 = vpop.f32.mrf.mxu0 }
 0x1c0   : > { %v975_v43 = vadd.f32 %v968_v37, %v871_v39  ;;  %v971_v44 = vpop.f32.mrf.mxu1 }
 0x1c1   : > { %v867_v46 = vpop.f32.mrf.mxu0 }
 0x1c2   : > { %v872_v47 = vadd.f32 %v867_v46, %v768_v42  ;;  %v1482_v48 = vpop.f32.mrf.mxu1  ;;  %v984_v50 = vadd.f32 %v1284_v45, %v975_v43 }
 0x1c3   : > { %v1462_v49 = vpop.f32.mrf.mxu0 }
 0x1c4   : > { %v976_v51 = vadd.f32 %v971_v44, %v872_v47  ;;  %v986_v53 = vmax.f32 %v984_v50, 0.0 }
 0x1c6   : > { %v985_v52 = vadd.f32 %v1284_v45, %v976_v51 }
 0x1c8   : > { %v987_v54 = vmax.f32 %v985_v52, 0.0 }
 0x1ca   : > { %v988_v55 = vpack.c.bf16 %v987_v54, %v986_v53 }
 0x1cc   : > { %1500 = vmatmul.mubr.bf16.vlgmr.msra.gmra.mxu0 %v988_v55 }
 0x28c   : > { %v1094_v57 = vpop.f32.mrf.mxu0 }
 0x28d   : > { %v1095_v58 = vadd.f32 %v1285_v56, %v1094_v57 }
 0x28e   : > { %v1501_v59 = vpop.f32.mrf.mxu0 }
 0x28f   : > { %1101 = vst [vmem:[%s248_s14] sm:$0xff] %v1095_v58 }
 0x290   : > { %v1097_v60 = vpop.f32.mrf.mxu0 }
 0x291   : > { %v1098_v61 = vadd.f32 %v1285_v56, %v1097_v60 }
 0x292   : > { %v1502_v62 = vpop.f32.mrf.mxu0 }
 0x293   : > { %1102 = vst [vmem:[%s248_s14 + $0x8] sm:$0xff] %v1098_v61 }
 0x294   : > { %1706 = shalt.err (!%p1703_p3)
}
 0x295   : > { %s1707_s8 = scalar_lea.hbm %s2013_s25, 256  ;;  %s1711_s11 = scalar_lea.hbm %s2060_s5, 512 }
 0x296   : > { %p1708_p2 = scmp.ne.s32.totalorder %s2013_s25, %s1707_s8  ;;  %p1712_p7 = scmp.lt.s32.totalorder %s2013_s25, %s2060_s5 }
 0x297   : > { %p1713_p6 = scmp.lt.s32.totalorder %s1711_s11, %s1707_s8 }
 0x298   : > { %p1709_p4 = pnand %p1708_p2, %p1847_p5 }
 0x299   : > { %p1714_p9 = por %p1713_p6, %p1712_p7 }
 0x29a   : > { %p1710_p13 = pneg %p1709_p4 }
 0x29c   : > { %p1715_p10 = pnand %p1714_p9, %p1710_p13 }
 0x29e   : > { %1718 = shalt.err (!%p1715_p10)
}
 0x29f   : > { %s1777_s14 = smov 128   ;;  %s1778_s16 = smov 8  }
 0x2a0   : > { %1511 = dma.vmem_to_hbm [thread:$0]  (%p1847_p5), %s2008_s15, 256, %s2013_s25, %s2015_s26, %s1777_s14, %s1777_s14, %s1778_s16  }
 0x2a1 PF: > { %p1528_p12 = scmp.ge.s32.totalorder %s1761_s21, 2  ;;  %s1132_s17 = sand.u32 1, %s1749_s18  }
 0x2a2   : > { %p2070_p8 = scmp.ne.s32.totalorder %s2063_s29, 0  ;;  %s1133_s23 = scalar_lea.sflag [#allocation4], %s1132_s17 }
 0x2a4   : > { %p1521_p11 = pnand %p1528_p12, %p2070_p8 }
 0x2a6   : > { %p1522_p0 = pneg %p1521_p11 }
 0x2a8   : > { %1744 = dma.done.wait (%p1522_p0), %s1133_s23, 256  }
 0x2a9   : > { %1746 = vsyncadd (%p1522_p0), %s1133_s23, 4294967040  ;;  %p17_p1 = scmp.ge.s32.totalorder %s1834_s24, 4   ;;  %s2071_s18 = smov %s1753_s19 }
 0x2aa   : > { %s2072_s19 = smov %s1757_s20  ;;  %s2073_s20 = smov %s1845_s27 }
 0x2ab   : > { %s2074_s21 = smov %s1834_s24  ;;  %19 = sbr.rel (!%p17_p1) target bundleno = 5 (0x5), region = 84 }
 0x2b0   :  { %1138 = vsyncpa [#allocation3], 1 }
 0x2b1   :  { %1140 = vsyncpa [#allocation3 + $0x1], 1 }
 0x2b2   :  { %1141 = vsyncpa [#allocation6], 1 }
 0x2b3   :  { %1142 = vsyncpa [#allocation4], 1 }
 0x2b4   :  { %1144 = vsyncpa [#allocation4 + $0x1], 1 }

</bundles_post_ra>
